<compile_context>
chip_gen: v5e
topology: v5e:2x2
jax: 0.10.0
libtpu: 0.0.40
codegen_flags: <defaults>
</compile_context>

<pallas_src>
import jax
import jax.numpy as jnp
from jax.experimental import pallas as pl
from jax.experimental.pallas import tpu as pltpu


def _ngram_kernel(ids_ref, emb_t_ref, w1_t_ref, b1_ref, w2_ref, b2_ref, o_ref):
    # ids_ref  : (2, TILE_B) int32   -- batch along lanes
    # emb_t_ref: (E, V)      f32     -- embedding table, transposed
    # w1_t_ref : (128, 2E)   f32     -- torch linear1.weight layout (out, in)
    # b1_ref   : (128, 1)    f32
    # w2_ref   : (128, 1)    f32     -- torch linear2.weight, transposed
    # b2_ref   : (1, 1)      f32     -- SMEM scalar
    # o_ref    : (1, TILE_B) f32     -- lane-dense output row
    e, v = emb_t_ref.shape
    tile_b = ids_ref.shape[1]

    ids = ids_ref[...]                                                 # (2, TILE_B)
    iota_v = jax.lax.broadcasted_iota(jnp.int32, (v, tile_b), 0)

    # Exact embedding gather via one-hot matmuls on the MXU:
    #   (E, V) @ (V, TILE_B one-hot) -> (E, TILE_B)
    oh0 = (iota_v == ids[0:1, :]).astype(jnp.float32)
    oh1 = (iota_v == ids[1:2, :]).astype(jnp.float32)
    e0 = jnp.dot(emb_t_ref[...], oh0, preferred_element_type=jnp.float32)
    e1 = jnp.dot(emb_t_ref[...], oh1, preferred_element_type=jnp.float32)
    x_t = jnp.concatenate([e0, e1], axis=0)                            # (2E, TILE_B)

    # Linear1 + bias + ReLU (MXU, f32 accumulate), feature-major.
    h = jnp.dot(w1_t_ref[...], x_t, preferred_element_type=jnp.float32)  # (128, TILE_B)
    h = jnp.maximum(h + b1_ref[...], 0.0)

    # Linear2 (128 -> 1) as VPU multiply + sublane reduce (MXU stays free),
    # producing a lane-dense (1, TILE_B) logit row directly.
    logit = jnp.sum(h * w2_ref[...], axis=0, keepdims=True) + b2_ref[0, 0]
    o_ref[...] = jax.nn.sigmoid(logit)


def global_ngram_forward(inputs, params, batch_size=None, tile_b=512):
    """inputs: (B, 2) int32 token ids. Returns (B,) float32 probabilities."""
    if batch_size is None:
        batch_size = inputs.shape[0]

    emb = params["embeddings"]          # (V, E)
    w1 = params["linear1_w"]            # (128, 2E)  torch layout (out, in)
    b1 = params["linear1_b"]            # (128,)
    w2 = params["linear2_w"]            # (1, 128)
    b2 = params["linear2_b"]            # (1,)
    v, e = emb.shape
    hidden = w1.shape[0]

    # Batch tiling: one lane-dense tile for small B, tile_b-wide tiles otherwise.
    if batch_size <= tile_b:
        tile = ((batch_size + 127) // 128) * 128
    else:
        tile = tile_b
    b_pad = ((batch_size + tile - 1) // tile) * tile
    n_tiles = b_pad // tile

    # Feature-major operands (tiny one-time transposes/pads outside the kernel).
    ids_t = jnp.zeros((2, b_pad), jnp.int32).at[:, :batch_size].set(inputs.T)
    emb_t = emb.T                                   # (E, V)
    b1_col = b1.reshape(hidden, 1)
    w2_col = w2.reshape(hidden, 1)
    b2_s = b2.reshape(1, 1)

    flops_per_ex = 2 * (2 * e * v) + 2 * (2 * e) * hidden + 2 * hidden
    cost = pl.CostEstimate(
        flops=b_pad * flops_per_ex,
        transcendentals=b_pad,
        bytes_accessed=(ids_t.size * 4 + b_pad * 4
                        + (emb.size + w1.size + b1.size + w2.size + b2.size) * 4),
    )

    out = pl.pallas_call(
        _ngram_kernel,
        out_shape=jax.ShapeDtypeStruct((1, b_pad), jnp.float32),
        grid=(n_tiles,),
        in_specs=[
            pl.BlockSpec((2, tile), lambda i: (0, i)),            # per-tile ids
            pl.BlockSpec(emb_t.shape, lambda i: (0, 0)),          # weights stay
            pl.BlockSpec(w1.shape, lambda i: (0, 0)),             #  VMEM-resident
            pl.BlockSpec(b1_col.shape, lambda i: (0, 0)),         #  across tiles
            pl.BlockSpec(w2_col.shape, lambda i: (0, 0)),
            pl.BlockSpec(memory_space=pltpu.MemorySpace.SMEM),    # b2 scalar
        ],
        out_specs=pl.BlockSpec((1, tile), lambda i: (0, i)),
        compiler_params=pltpu.CompilerParams(
            dimension_semantics=("parallel",),
        ),
        cost_estimate=cost,
    )(ids_t, emb_t, w1, b1_col, w2_col, b2_s)

    return out[0, :batch_size]


def init_params(key, vocab_size, embedding_dim, hidden=128):
    """Deterministic parameter init; layouts match the torch module."""
    k_emb, k_w1, k_b1, k_w2, k_b2 = jax.random.split(key, 5)
    two_e = 2 * embedding_dim
    lim1 = 1.0 / (two_e ** 0.5)
    lim2 = 1.0 / (hidden ** 0.5)
    return {
        "embeddings": jax.random.normal(k_emb, (vocab_size, embedding_dim), jnp.float32),
        # torch nn.Linear stores weight as (out_features, in_features).
        "linear1_w": jax.random.uniform(k_w1, (hidden, two_e), jnp.float32, -lim1, lim1),
        "linear1_b": jax.random.uniform(k_b1, (hidden,), jnp.float32, -lim1, lim1),
        "linear2_w": jax.random.uniform(k_w2, (1, hidden), jnp.float32, -lim2, lim2),
        "linear2_b": jax.random.uniform(k_b2, (1,), jnp.float32, -lim2, lim2),
    }


if __name__ == "__main__":
    vocab_size = 50
    embedding_dim = 16
    half_window = 1          # unused in forward (as in the torch module)
    batch_size = 8

    key = jax.random.PRNGKey(0)
    k_params, k_inputs = jax.random.split(key)
    params = init_params(k_params, vocab_size, embedding_dim)

    # Each example is a pair of context tokens -> (B, 2), matching 2*E in linear1.
    inputs = jax.random.randint(k_inputs, (batch_size, 2), 0, vocab_size, jnp.int32)

    out = global_ngram_forward(inputs, params, batch_size)
    out = jax.block_until_ready(out)

    # Plain-JAX reference mirroring the torch forward.
    embeds = jnp.take(params["embeddings"], inputs, axis=0).reshape(batch_size, -1)
    h = jnp.maximum(embeds @ params["linear1_w"].T + params["linear1_b"], 0.0)
    ref = jax.nn.sigmoid(h @ params["linear2_w"].T + params["linear2_b"]).reshape(-1)

    assert out.shape == (batch_size,)
    assert jnp.allclose(out, ref, atol=1e-5), "mismatch vs reference"

    print("KERNEL_OK")
</pallas_src>

<mosaic_0001>
module attributes {stable_mosaic.version = 11 : i64} {
  func.func @_ngram_kernel(%arg0: i32, %arg1: memref<2x128xi32, #tpu.memory_space<vmem>>, %arg2: memref<16x50xf32, #tpu.memory_space<vmem>>, %arg3: memref<128x32xf32, #tpu.memory_space<vmem>>, %arg4: memref<128x1xf32, #tpu.memory_space<vmem>>, %arg5: memref<128x1xf32, #tpu.memory_space<vmem>>, %arg6: memref<1x1xf32, #tpu.memory_space<smem>>, %arg7: memref<1x128xf32, #tpu.memory_space<vmem>>) attributes {dimension_semantics = [#tpu.dimension_semantics<parallel>], iteration_bounds = array<i64: 1>, scalar_prefetch = 0 : i64, scratch_operands = 0 : i64, tpu.core_type = #tpu.core_type<tc>, window_params = [{transform_indices = @transform_0, window_bounds = array<i64: 2, 128>}, {pipeline_mode = #tpu.pipeline_mode<synchronous>, transform_indices = @transform_1, window_bounds = array<i64: 16, 50>}, {pipeline_mode = #tpu.pipeline_mode<synchronous>, transform_indices = @transform_2, window_bounds = array<i64: 128, 32>}, {pipeline_mode = #tpu.pipeline_mode<synchronous>, transform_indices = @transform_3, window_bounds = array<i64: 128, 1>}, {pipeline_mode = #tpu.pipeline_mode<synchronous>, transform_indices = @transform_4, window_bounds = array<i64: 128, 1>}, {transform_indices = @transform_5, window_bounds = array<i64: 1, 1>}, {transform_indices = @transform_6, window_bounds = array<i64: 1, 128>}]} {
    %c0 = arith.constant 0 : index
    %c0_0 = arith.constant 0 : index
    %0 = vector.load %arg1[%c0, %c0_0] : memref<2x128xi32, #tpu.memory_space<vmem>>, vector<2x128xi32>
    %1 = tpu.iota {dimensions = array<i32: 0>} : vector<50x128xi32>
    %2 = vector.extract_strided_slice %0 {offsets = [0, 0], sizes = [1, 128], strides = [1, 1]} : vector<2x128xi32> to vector<1x128xi32>
    %3 = vector.broadcast %2 : vector<1x128xi32> to vector<50x128xi32>
    %4 = arith.cmpi eq, %1, %3 : vector<50x128xi32>
    %5 = arith.extui %4 : vector<50x128xi1> to vector<50x128xi32>
    %6 = arith.sitofp %5 : vector<50x128xi32> to vector<50x128xf32>
    %7 = vector.extract_strided_slice %0 {offsets = [1, 0], sizes = [1, 128], strides = [1, 1]} : vector<2x128xi32> to vector<1x128xi32>
    %8 = vector.broadcast %7 : vector<1x128xi32> to vector<50x128xi32>
    %9 = arith.cmpi eq, %1, %8 : vector<50x128xi32>
    %10 = arith.extui %9 : vector<50x128xi1> to vector<50x128xi32>
    %11 = arith.sitofp %10 : vector<50x128xi32> to vector<50x128xf32>
    %c0_1 = arith.constant 0 : index
    %c0_2 = arith.constant 0 : index
    %12 = vector.load %arg2[%c0_1, %c0_2] : memref<16x50xf32, #tpu.memory_space<vmem>>, vector<16x50xf32>
    %cst = arith.constant dense<0.000000e+00> : vector<16x128xf32>
    %13 = tpu.matmul %12, %6, %cst {dimension_numbers = #tpu.dot_dimension_numbers<[1], [0], [0], [1], [0, 0, 1, 1], [], []>} : vector<16x50xf32>, vector<50x128xf32>, vector<16x128xf32> -> vector<16x128xf32>
    %c0_3 = arith.constant 0 : index
    %c0_4 = arith.constant 0 : index
    %14 = vector.load %arg2[%c0_3, %c0_4] : memref<16x50xf32, #tpu.memory_space<vmem>>, vector<16x50xf32>
    %cst_5 = arith.constant dense<0.000000e+00> : vector<16x128xf32>
    %15 = tpu.matmul %14, %11, %cst_5 {dimension_numbers = #tpu.dot_dimension_numbers<[1], [0], [0], [1], [0, 0, 1, 1], [], []>} : vector<16x50xf32>, vector<50x128xf32>, vector<16x128xf32> -> vector<16x128xf32>
    %16 = tpu.concatenate %13, %15 in 0 : vector<16x128xf32>, vector<16x128xf32> -> vector<32x128xf32>
    %c0_6 = arith.constant 0 : index
    %c0_7 = arith.constant 0 : index
    %17 = vector.load %arg3[%c0_6, %c0_7] : memref<128x32xf32, #tpu.memory_space<vmem>>, vector<128x32xf32>
    %cst_8 = arith.constant dense<0.000000e+00> : vector<128x128xf32>
    %18 = tpu.matmul %17, %16, %cst_8 {dimension_numbers = #tpu.dot_dimension_numbers<[1], [0], [0], [1], [0, 0, 1, 1], [], []>} : vector<128x32xf32>, vector<32x128xf32>, vector<128x128xf32> -> vector<128x128xf32>
    %c0_9 = arith.constant 0 : index
    %c0_10 = arith.constant 0 : index
    %19 = vector.load %arg4[%c0_9, %c0_10] : memref<128x1xf32, #tpu.memory_space<vmem>>, vector<128x1xf32>
    %20 = vector.broadcast %19 : vector<128x1xf32> to vector<128x128xf32>
    %21 = arith.addf %18, %20 : vector<128x128xf32>
    %cst_11 = arith.constant 0.000000e+00 : f32
    %22 = vector.broadcast %cst_11 : f32 to vector<128x128xf32>
    %23 = arith.maximumf %21, %22 : vector<128x128xf32>
    %c0_12 = arith.constant 0 : index
    %c0_13 = arith.constant 0 : index
    %24 = vector.load %arg5[%c0_12, %c0_13] : memref<128x1xf32, #tpu.memory_space<vmem>>, vector<128x1xf32>
    %25 = vector.broadcast %24 : vector<128x1xf32> to vector<128x128xf32>
    %26 = arith.mulf %23, %25 : vector<128x128xf32>
    %cst_14 = arith.constant dense<0.000000e+00> : vector<128xf32>
    %27 = vector.multi_reduction <add>, %26, %cst_14 [0] : vector<128x128xf32> to vector<128xf32>
    %28 = vector.shape_cast %27 : vector<128xf32> to vector<1x128xf32>
    %c0_15 = arith.constant 0 : index
    %c0_16 = arith.constant 0 : index
    %29 = memref.load %arg6[%c0_15, %c0_16] : memref<1x1xf32, #tpu.memory_space<smem>>
    %30 = vector.broadcast %29 : f32 to vector<1x128xf32>
    %31 = arith.addf %28, %30 : vector<1x128xf32>
    %32 = arith.negf %31 : vector<1x128xf32>
    %33 = math.exp %32 : vector<1x128xf32>
    %cst_17 = arith.constant 1.000000e+00 : f32
    %34 = vector.broadcast %cst_17 : f32 to vector<1x128xf32>
    %35 = arith.addf %34, %33 : vector<1x128xf32>
    %36 = arith.divf %34, %35 : vector<1x128xf32>
    %c0_18 = arith.constant 0 : index
    %c0_19 = arith.constant 0 : index
    %37 = vector.load %arg7[%c0_18, %c0_19] : memref<1x128xf32, #tpu.memory_space<vmem>>, vector<1x128xf32>
    tpu.vector_store %arg7[%c0_18, %c0_19], %36 {strides = array<i32>} : memref<1x128xf32, #tpu.memory_space<vmem>>, vector<1x128xf32>,
    return
  }
  func.func @transform_0(%arg0: i32) -> (i32, i32) {
    %c0_i32 = arith.constant 0 : i32
    %c0_i32_0 = arith.constant 0 : i32
    return %c0_i32, %arg0 : i32, i32
  }
  func.func @transform_1(%arg0: i32) -> (i32, i32) {
    %c0_i32 = arith.constant 0 : i32
    %c0_i32_0 = arith.constant 0 : i32
    %c0_i32_1 = arith.constant 0 : i32
    return %c0_i32, %c0_i32_0 : i32, i32
  }
  func.func @transform_2(%arg0: i32) -> (i32, i32) {
    %c0_i32 = arith.constant 0 : i32
    %c0_i32_0 = arith.constant 0 : i32
    %c0_i32_1 = arith.constant 0 : i32
    return %c0_i32, %c0_i32_0 : i32, i32
  }
  func.func @transform_3(%arg0: i32) -> (i32, i32) {
    %c0_i32 = arith.constant 0 : i32
    %c0_i32_0 = arith.constant 0 : i32
    %c0_i32_1 = arith.constant 0 : i32
    return %c0_i32, %c0_i32_0 : i32, i32
  }
  func.func @transform_4(%arg0: i32) -> (i32, i32) {
    %c0_i32 = arith.constant 0 : i32
    %c0_i32_0 = arith.constant 0 : i32
    %c0_i32_1 = arith.constant 0 : i32
    return %c0_i32, %c0_i32_0 : i32, i32
  }
  func.func @transform_5(%arg0: i32) -> (i32, i32) {
    %c0_i32 = arith.constant 0 : i32
    %c0_i32_0 = arith.constant 0 : i32
    %c0_i32_1 = arith.constant 0 : i32
    return %c0_i32, %c0_i32_0 : i32, i32
  }
  func.func @transform_6(%arg0: i32) -> (i32, i32) {
    %c0_i32 = arith.constant 0 : i32
    %c0_i32_0 = arith.constant 0 : i32
    return %c0_i32, %arg0 : i32, i32
  }
}

</mosaic_0001>

<bundles_post_ra>
// kernel: tpu_custom_call.1
= control target key start
LH: loop header
LB: loop body
LE: loop exit
PB: predicated region body
PF: predicated region fallthrough
CT: control target
= control target key end

     0   :  { %v26_v1 = vlaneseq  ;;  %s884_s0 = inlined_call_operand.vmem [shape: s32[2,128], index: 0, kind: input, shape index: {}]   ;;  %s885_s1 = inlined_call_operand.vmem [shape: f32[16,50], index: 1, kind: input, shape index: {}]   ;;  %s886_s2 = inlined_call_operand.vmem [shape: f32[128,32], index: 2, kind: input, shape index: {}]   ;;  %s887_s3 = inlined_call_operand.vmem [shape: f32[128,1], index: 3, kind: input, shape index: {}]   ;;  %s888_s4 = inlined_call_operand.vmem [shape: f32[128,1], index: 4, kind: input, shape index: {}]   ;;  %s889_s5 = inlined_call_operand.<no memory space> [shape: f32[1,1], index: 5, kind: input, shape index: {}]   ;;  %s890_s6 = inlined_call_operand.hbm [shape: f32[1,128], index: 6, kind: output, shape index: {}]  }
   0x1   :  { %v25_v0 = vld [vmem:[%s884_s0] sm:$0x3] }
   0x2   :  { %12 = vsyncpa [#allocation4], 0  ;;  %v690_v2 = vshrl.u32 %v26_v1, 7  ;;  %v34_v3 = vperm.slane %v25_v0, 0  ;;  %vm87_vm0 = vcmask 1041408   ;;  %v648_v7 = vmov 0.0  }
   0x3   :  { %v649_v11 = vmov 1.0   ;;  %v56_v13 = vperm.slane %v25_v0, 1  ;;  %v156_v14 = vld [vmem:[%s887_s3] sm:$0xff]  ;;  %v158_v15 = vld [vmem:[%s887_s3 + $0x10] sm:$0xff]  ;;  %v650_v16 = vmov 0   ;;  %vm80_vm9 = vcmask 408576  }
   0x4   :  { %v33_v4 = vadd.s32 48, %v690_v2  ;;  %v32_v5 = vadd.s32 40, %v690_v2  ;;  %v31_v6 = vadd.s32 32, %v690_v2  ;;  %v30_v9 = vadd.s32 24, %v690_v2  ;;  %615 = vset.pattern.permute.xlu0 %v650_v16  ;;  %616 = vset.pattern.permute.xlu1 %v650_v16  ;;  %v160_v17 = vld [vmem:[%s887_s3 + $0x20] sm:$0xff]  ;;  %v157_v20 = vld [vmem:[%s887_s3 + $0x8] sm:$0xff] }
   0x5   :  { %v29_v10 = vadd.s32 16, %v690_v2  ;;  %v28_v12 = vadd.s32 8, %v690_v2  ;;  %174 = vperm.xlu0 %615, %v156_v14   ;;  %184 = vperm.xlu1 %616, %v158_v15   ;;  %vm35_vm8 = vcmp.eq.s32.totalorder %v690_v2, %v34_v3  ;;  %v78_v18 = vld [vmem:[%s885_s1] sm:$0xff]  ;;  %v159_v21 = vld [vmem:[%s887_s3 + $0x18] sm:$0xff]  ;;  %v161_v22 = vld [vmem:[%s887_s3 + $0x28] sm:$0xff]  ;;  %vm57_vm15 = vcmp.eq.s32.totalorder %v690_v2, %v56_v13  ;;  %s651_s17 = smov [#allocation3]  }
   0x6   :  { %vm41_vm1 = vcmp.eq.s32.totalorder %v33_v4, %v34_v3  ;;  %vm40_vm2 = vcmp.eq.s32.totalorder %v32_v5, %v34_v3  ;;  %vm39_vm3 = vcmp.eq.s32.totalorder %v31_v6, %v34_v3  ;;  %vm38_vm4 = vcmp.eq.s32.totalorder %v30_v9, %v34_v3  ;;  %617 = vset.pattern.permute.xlu2 %v650_v16  ;;  %v79_v23 = vld [vmem:[%s885_s1 + $0x8] sm:$0xff]  ;;  %v162_v24 = vld [vmem:[%s887_s3 + $0x30] sm:$0xff]  ;;  %v163_v25 = vld [vmem:[%s887_s3 + $0x38] sm:$0xff]  ;;  %s543_s1 = sshll.u32 %s651_s17, 4  ;;  %s544_s1 = int_to_ptr.vmem [resolvable:$true] %s543_s1 }
   0x7   :  { %v560_v8 = vsel %vm41_vm1, 1.0, %v648_v7  ;;  %vm37_vm5 = vcmp.eq.s32.totalorder %v29_v10, %v34_v3  ;;  %vm36_vm6 = vcmp.eq.s32.totalorder %v28_v12, %v34_v3  ;;  %vm63_vm7 = vcmp.eq.s32.totalorder %v33_v4, %v56_v13  ;;  %194 = vperm.xlu2 %617, %v160_v17   ;;  %v164_v26 = vld [vmem:[%s887_s3 + $0x40] sm:$0xff]  ;;  %v165_v27 = vld [vmem:[%s887_s3 + $0x48] sm:$0xff]  ;;  %v166_v28 = vld [vmem:[%s887_s3 + $0x50] sm:$0xff] }
   0x8   :  { %568 = vmatpush.msk.msra.mxu1 %vm87_vm0, %v560_v8  ;;  %v567_v19 = vsel %vm63_vm7, 1.0, %v648_v7  ;;  %vm62_vm10 = vcmp.eq.s32.totalorder %v32_v5, %v56_v13  ;;  %vm61_vm11 = vcmp.eq.s32.totalorder %v31_v6, %v56_v13  ;;  %vm60_vm12 = vcmp.eq.s32.totalorder %v30_v9, %v56_v13  ;;  %v168_v29 = vld [vmem:[%s887_s3 + $0x60] sm:$0xff]  ;;  %v384_v31 = vld [vmem:[%s888_s4 + $0x10] sm:$0xff]  ;;  %v385_v32 = vld [vmem:[%s888_s4 + $0x18] sm:$0xff] }
   0x9   :  { %vm59_vm13 = vcmp.eq.s32.totalorder %v29_v10, %v56_v13  ;;  %vm58_vm14 = vcmp.eq.s32.totalorder %v28_v12, %v56_v13  ;;  %v382_v30 = vld [vmem:[%s888_s4] sm:$0xff]  ;;  %v387_v33 = vld [vmem:[%s888_s4 + $0x28] sm:$0xff]  ;;  %v388_v34 = vld [vmem:[%s888_s4 + $0x30] sm:$0xff] }
   0xa   :  { %569 = vmatpush.msk.msra.mxu1 %vm40_vm2, %v649_v11  ;;  %v390_v35 = vld [vmem:[%s888_s4 + $0x40] sm:$0xff]  ;;  %v391_v36 = vld [vmem:[%s888_s4 + $0x48] sm:$0xff]  ;;  %v167_v37 = vld [vmem:[%s887_s3 + $0x58] sm:$0xff] }
   0xb   :  { %v169_v38 = vld [vmem:[%s887_s3 + $0x68] sm:$0xff]  ;;  %v393_v39 = vld [vmem:[%s888_s4 + $0x58] sm:$0xff]  ;;  %v394_v41 = vld [vmem:[%s888_s4 + $0x60] sm:$0xff] }
   0xc   :  { %570 = vmatpush.msk.msra.mxu1 %vm39_vm3, %v649_v11  ;;  %v383_v40 = vld [vmem:[%s888_s4 + $0x8] sm:$0xff]  ;;  %v171_v42 = vld [vmem:[%s887_s3 + $0x78] sm:$0xff]  ;;  %v386_v43 = vld [vmem:[%s888_s4 + $0x20] sm:$0xff] }
   0xd   :  { %179 = vperm.xlu0 %615, %v157_v20   ;;  %189 = vperm.xlu1 %616, %v159_v21   ;;  %v396_v44 = vld [vmem:[%s888_s4 + $0x70] sm:$0xff]  ;;  %v397_v45 = vld [vmem:[%s888_s4 + $0x78] sm:$0xff]  ;;  %v395_v52 = vld [vmem:[%s888_s4 + $0x68] sm:$0xff] }
   0xe   :  { %571 = vmatpush.msk.msra.mxu1 %vm38_vm4, %v649_v11  ;;  %v389_v46 = vld [vmem:[%s888_s4 + $0x38] sm:$0xff]  ;;  %v392_v48 = vld [vmem:[%s888_s4 + $0x50] sm:$0xff]  ;;  %v140_v54 = vld [vmem:[%s886_s2] sm:$0xff] }
   0xf   :  { %199 = vperm.xlu2 %617, %v161_v22   ;;  %v170_v50 = vld [vmem:[%s887_s3 + $0x70] sm:$0xff]  ;;  %v144_v55 = vld [vmem:[%s886_s2 + $0x20] sm:$0xff]  ;;  %v141_v57 = vld [vmem:[%s886_s2 + $0x8] sm:$0xff] }
  0x10   :  { %572 = vmatpush.msk.msra.mxu1 %vm37_vm5, %v649_v11  ;;  %v150_v56 = vld [vmem:[%s886_s2 + $0x50] sm:$0xff]  ;;  %v145_v58 = vld [vmem:[%s886_s2 + $0x28] sm:$0xff]  ;;  %v151_v59 = vld [vmem:[%s886_s2 + $0x58] sm:$0xff] }
  0x11   :  { %v142_v60 = vld [vmem:[%s886_s2 + $0x10] sm:$0xff]  ;;  %v152_v62 = vld [vmem:[%s886_s2 + $0x60] sm:$0xff]  ;;  %v143_v63 = vld [vmem:[%s886_s2 + $0x18] sm:$0xff] }
  0x12   :  { %573 = vmatpush.msk.msra.mxu1 %vm36_vm6, %v649_v11  ;;  %v146_v61 = vld [vmem:[%s886_s2 + $0x30] sm:$0xff]  ;;  %v147_v0 = vld [vmem:[%s886_s2 + $0x38] sm:$0xff]  ;;  %v153_v1 = vld [vmem:[%s886_s2 + $0x68] sm:$0xff] }
  0x13   :  { %v148_v2 = vld [vmem:[%s886_s2 + $0x40] sm:$0xff]  ;;  %v154_v3 = vld [vmem:[%s886_s2 + $0x70] sm:$0xff]  ;;  %v149_v4 = vld [vmem:[%s886_s2 + $0x48] sm:$0xff] }
  0x14   :  { %574 = vmatpush.msk.msra.mxu1 %vm35_vm8, %v649_v11  ;;  %v155_v5 = vld [vmem:[%s886_s2 + $0x78] sm:$0xff] }
  0x15   :  { %575 = vmatmul.msk.f32.vlgmr.msra.gmra.mxu1 %vm80_vm9, %v78_v18  ;;  %204 = vperm.xlu0 %615, %v162_v24  }
  0x16   :  { %577 = vmatpush.msk.msrb.mxu1 %vm87_vm0, %v567_v19  ;;  %209 = vperm.xlu1 %616, %v163_v25   ;;  %vm252_vm0 = vcmask 261120  }
  0x17   :  { %214 = vperm.xlu2 %617, %v164_v26  }
  0x18   :  { %578 = vmatpush.msk.msrb.mxu1 %vm62_vm10, %v649_v11 }
  0x1a   :  { %579 = vmatpush.msk.msrb.mxu1 %vm61_vm11, %v649_v11 }
  0x1c   :  { %580 = vmatpush.msk.msrb.mxu1 %vm60_vm12, %v649_v11 }
  0x1d   :  { %576 = vmatmul.msk.f32.gmra.mxu1 %vm80_vm9, %v79_v23  ;;  %219 = vperm.xlu0 %615, %v165_v27  }
  0x1e   :  { %581 = vmatpush.msk.msrb.mxu1 %vm59_vm13, %v649_v11  ;;  %224 = vperm.xlu1 %616, %v166_v28  }
  0x1f   :  { %229 = vperm.xlu2 %617, %v167_v37  }
  0x20   :  { %582 = vmatpush.msk.msrb.mxu1 %vm58_vm14, %v649_v11 }
  0x22   :  { %583 = vmatpush.msk.msrb.mxu1 %vm57_vm15, %v649_v11 }
  0x25   :  { %584 = vmatmul.msk.f32.vlgmr.msrb.gmra.mxu1 %vm80_vm9, %v78_v18  ;;  %234 = vperm.xlu0 %615, %v168_v29  }
  0x26   :  { %400 = vperm.xlu1 %616, %v382_v30  }
  0x27   :  { %405 = vperm.xlu2 %617, %v383_v40  }
  0x2d   :  { %585 = vmatmul.msk.f32.gmra.mxu1 %vm80_vm9, %v79_v23  ;;  %410 = vperm.xlu0 %615, %v384_v31  }
  0x2e   :  { %415 = vperm.xlu1 %616, %v385_v32  }
  0x2f   :  { %420 = vperm.xlu2 %617, %v386_v43  }
  0x35   :  { %425 = vperm.xlu0 %615, %v387_v33  }
  0x36   :  { %430 = vperm.xlu1 %616, %v388_v34  }
  0x37   :  { %435 = vperm.xlu2 %617, %v389_v46  }
  0x3d   :  { %440 = vperm.xlu0 %615, %v390_v35  }
  0x3e   :  { %445 = vperm.xlu1 %616, %v391_v36  }
  0x3f   :  { %450 = vperm.xlu2 %617, %v392_v48  }
  0x45   :  { %239 = vperm.xlu0 %615, %v169_v38  }
  0x46   :  { %455 = vperm.xlu1 %616, %v393_v39  }
  0x47   :  { %244 = vperm.xlu2 %617, %v170_v50  }
  0x4d   :  { %460 = vperm.xlu0 %615, %v394_v41  }
  0x4e   :  { %249 = vperm.xlu1 %616, %v171_v42  }
  0x4f   :  { %465 = vperm.xlu2 %617, %v395_v52  }
  0x55   :  { %470 = vperm.xlu0 %615, %v396_v44  }
  0x56   :  { %475 = vperm.xlu1 %616, %v397_v45  }
  0x61   :  { %v195_v8 = vpop.permute.xlu2 %194 }
  0x69   :  { %v200_v11 = vpop.permute.xlu2 %199 }
  0x71   :  { %v215_v14 = vpop.permute.xlu2 %214 }
  0x77   :  { %v175_v6 = vpop.permute.xlu0 %174  ;;  %v185_v7 = vpop.permute.xlu1 %184 }
  0x79   :  { %v230_v17 = vpop.permute.xlu2 %229 }
  0x7f   :  { %v180_v9 = vpop.permute.xlu0 %179  ;;  %v190_v10 = vpop.permute.xlu1 %189 }
  0x81   :  { %v406_v24 = vpop.permute.xlu2 %405 }
  0x87   :  { %v205_v12 = vpop.permute.xlu0 %204 }
  0x88   :  { %v210_v13 = vpop.permute.xlu1 %209 }
  0x89   :  { %v421_v31 = vpop.permute.xlu2 %420 }
  0x8f   :  { %v872_v15 = vpop.permute.xlu0 %219 }
  0x90   :  { %v225_v16 = vpop.permute.xlu1 %224 }
  0x91   :  { %v436_v48 = vpop.permute.xlu2 %435 }
  0x92   :  { %v108_v47 = vpop.f32.mrf.mxu1 }
  0x97   :  { %v874_v19 = vpop.permute.xlu0 %234 }
  0x98   :  { %v401_v20 = vpop.permute.xlu1 %400 }
  0x9a   :  { %v111_v49 = vpop.f32.mrf.mxu1 }
  0x9f   :  { %v411_v25 = vpop.permute.xlu0 %410 }
  0xa0   :  { %v416_v26 = vpop.permute.xlu1 %415 }
  0xa2   :  { %v134_v51 = vpop.f32.mrf.mxu1 }
  0xa7   :  { %v426_v34 = vpop.permute.xlu0 %425 }
  0xa8   :  { %v431_v35 = vpop.permute.xlu1 %430 }
  0xaa   :  { %v137_v53 = vpop.f32.mrf.mxu1 }
  0xab   :  { %313 = vmatpush.msra.mxu0 %v137_v53  ;;  %603 = vmatpush.msra.mxu2 %v137_v53 }
  0xac   :  { %604 = vmatpush.msra.mxu3 %v137_v53 }
  0xad   :  { %314 = vmatpush.msra.mxu0 %v134_v51  ;;  %605 = vmatpush.msra.mxu2 %v134_v51 }
  0xae   :  { %606 = vmatpush.msra.mxu3 %v134_v51 }
  0xaf   :  { %315 = vmatpush.msra.mxu0 %v111_v49  ;;  %607 = vmatpush.msra.mxu2 %v111_v49  ;;  %v441_v51 = vpop.permute.xlu0 %440 }
  0xb0   :  { %608 = vmatpush.msra.mxu3 %v111_v49 }
  0xb1   :  { %316 = vmatpush.msra.mxu0 %v108_v47  ;;  %609 = vmatpush.msra.mxu2 %v108_v47 }
  0xb2   :  { %610 = vmatpush.msra.mxu3 %v108_v47  ;;  %586 = vmatmul.msk.f32.vlgmr.msra.gmra.mxu0 %vm252_vm0, %v140_v54 }
  0xb3   :  { %590 = vmatmul.msk.f32.vlgmr.msra.gmra.mxu2 %vm252_vm0, %v144_v55  ;;  %596 = vmatmul.msk.f32.vlgmr.msra.gmra.mxu3 %vm252_vm0, %v150_v56  ;;  %v446_v56 = vpop.permute.xlu1 %445 }
  0xba   :  { %587 = vmatmul.msk.f32.gmra.mxu0 %vm252_vm0, %v141_v57 }
  0xbb   :  { %591 = vmatmul.msk.f32.gmra.mxu2 %vm252_vm0, %v145_v58  ;;  %597 = vmatmul.msk.f32.gmra.mxu3 %vm252_vm0, %v151_v59 }
  0xc2   :  { %588 = vmatmul.msk.f32.gmra.mxu0 %vm252_vm0, %v142_v60 }
  0xc3   :  { %592 = vmatmul.msk.f32.gmra.mxu2 %vm252_vm0, %v146_v61  ;;  %598 = vmatmul.msk.f32.gmra.mxu3 %vm252_vm0, %v152_v62 }
  0xca   :  { %589 = vmatmul.msk.f32.gmra.mxu0 %vm252_vm0, %v143_v63  ;;  %v451_v63 = vpop.permute.xlu2 %450 }
  0xcb   :  { %593 = vmatmul.msk.f32.gmra.mxu2 %vm252_vm0, %v147_v0  ;;  %599 = vmatmul.msk.f32.gmra.mxu3 %vm252_vm0, %v153_v1 }
  0xd3   :  { %594 = vmatmul.msk.f32.gmra.mxu2 %vm252_vm0, %v148_v2  ;;  %600 = vmatmul.msk.f32.gmra.mxu3 %vm252_vm0, %v154_v3 }
  0xdb   :  { %595 = vmatmul.msk.f32.gmra.mxu2 %vm252_vm0, %v149_v4  ;;  %601 = vmatmul.msk.f32.gmra.mxu3 %vm252_vm0, %v155_v5  ;;  %v240_v5 = vpop.permute.xlu0 %239 }
 0x12f   :  { %v318_v18 = vpop.f32.mrf.mxu0 }
 0x130   :  { %v319_v32 = vadd.f32 %v318_v18, %v175_v6 }
 0x132   :  { %v366_v39 = vmax.f32 %v319_v32, 0.0 }
 0x134   :  { %v478_v45 = vmul.f32 %v401_v20, %v366_v39 }
 0x136   :  { %v330_v21 = vpop.f32.mrf.mxu2  ;;  %v348_v22 = vpop.f32.mrf.mxu3 }
 0x137   :  { %v321_v23 = vpop.f32.mrf.mxu0  ;;  %v331_v46 = vadd.f32 %v330_v21, %v195_v8  ;;  %v349_v18 = vadd.f32 %v348_v22, %v225_v16 }
 0x138   :  { %v322_v30 = vadd.f32 %v321_v23, %v180_v9 }
 0x139   :  { %v370_v53 = vmax.f32 %v331_v46, 0.0 }
 0x13a   :  { %v367_v36 = vmax.f32 %v322_v30, 0.0  ;;  %v461_v30 = vpop.permute.xlu0 %460 }
 0x13b   :  { %v482_v59 = vmul.f32 %v421_v31, %v370_v53 }
 0x13c   :  { %v479_v43 = vmul.f32 %v406_v24, %v367_v36 }
 0x13e   :  { %v333_v27 = vpop.f32.mrf.mxu2  ;;  %v351_v28 = vpop.f32.mrf.mxu3  ;;  %v494_v49 = vadd.f32 %v479_v43, %v478_v45 }
 0x13f   :  { %v324_v29 = vpop.f32.mrf.mxu0  ;;  %v334_v54 = vadd.f32 %v333_v27, %v200_v11  ;;  %v352_v23 = vadd.f32 %v351_v28, %v230_v17  ;;  %v376_v27 = vmax.f32 %v349_v18, 0.0 }
 0x140   :  { %v325_v33 = vadd.f32 %v324_v29, %v185_v7  ;;  %v456_v7 = vpop.permute.xlu1 %455 }
 0x141   :  { %v371_v60 = vmax.f32 %v334_v54, 0.0  ;;  %v377_v31 = vmax.f32 %v352_v23, 0.0  ;;  %v488_v22 = vmul.f32 %v451_v63, %v376_v27 }
 0x142   :  { %v368_v40 = vmax.f32 %v325_v33, 0.0  ;;  %v471_v46 = vpop.permute.xlu0 %470 }
 0x143   :  { %v483_v1 = vmul.f32 %v426_v34, %v371_v60 }
 0x144   :  { %v480_v47 = vmul.f32 %v411_v25, %v368_v40 }
 0x146   :  { %v336_v37 = vpop.f32.mrf.mxu2  ;;  %v354_v38 = vpop.f32.mrf.mxu3  ;;  %v495_v55 = vadd.f32 %v494_v49, %v480_v47 }
 0x147   :  { %v327_v41 = vpop.f32.mrf.mxu0  ;;  %v337_v61 = vadd.f32 %v336_v37, %v205_v12  ;;  %v489_v37 = vmul.f32 %v456_v7, %v377_v31 }
 0x148   :  { %v328_v42 = vadd.f32 %v327_v41, %v190_v10 }
 0x149   :  { %v372_v2 = vmax.f32 %v337_v61, 0.0 }
 0x14a   :  { %v369_v44 = vmax.f32 %v328_v42, 0.0 }
 0x14b   :  { %v484_v9 = vmul.f32 %v431_v35, %v372_v2  ;;  %v250_v35 = vpop.permute.xlu1 %249 }
 0x14c   :  { %v481_v50 = vmul.f32 %v416_v26, %v369_v44  ;;  %v245_v26 = vpop.permute.xlu2 %244 }
 0x14e   :  { %v339_v52 = vpop.f32.mrf.mxu2  ;;  %v357_v57 = vpop.f32.mrf.mxu3  ;;  %v496_v58 = vadd.f32 %v495_v55, %v481_v50 }
 0x14f   :  { %v340_v3 = vadd.f32 %v339_v52, %v210_v13  ;;  %v355_v13 = vadd.f32 %v354_v38, %v874_v19  ;;  %v358_v32 = vadd.f32 %v357_v57, %v240_v5 }
 0x150   :  { %v497_v62 = vadd.f32 %v496_v58, %v482_v59  ;;  %v516_v58 = vstv %s889_s5  ;;  %s545_s5 = sshll.u32 %s890_s6, 4  ;;  %s546_s5 = int_to_ptr.hbm [resolvable:$true] %s545_s5 }
 0x151   :  { %v373_v10 = vmax.f32 %v340_v3, 0.0  ;;  %v378_v36 = vmax.f32 %v355_v13, 0.0  ;;  %v379_v39 = vmax.f32 %v358_v32, 0.0 }
 0x152   :  { %v498_v6 = vadd.f32 %v497_v62, %v483_v1 }
 0x153   :  { %v485_v24 = vmul.f32 %v436_v48, %v373_v10  ;;  %v490_v41 = vmul.f32 %v461_v30, %v378_v36  ;;  %v476_v49 = vpop.permute.xlu1 %475 }
 0x154   :  { %v499_v20 = vadd.f32 %v498_v6, %v484_v9  ;;  %v466_v38 = vpop.permute.xlu2 %465 }
 0x155   :  { %v491_v43 = vmul.f32 %v466_v38, %v379_v39 }
 0x156   :  { %v342_v0 = vpop.f32.mrf.mxu2  ;;  %v360_v8 = vpop.f32.mrf.mxu3 }
 0x157   :  { %v343_v4 = vadd.f32 %v342_v0, %v215_v14  ;;  %v500_v14 = vadd.f32 %v499_v20, %v485_v24  ;;  %v361_v17 = vadd.f32 %v360_v8, %v245_v26 }
 0x159   :  { %v374_v11 = vmax.f32 %v343_v4, 0.0  ;;  %v380_v42 = vmax.f32 %v361_v17, 0.0 }
 0x15b   :  { %v486_v12 = vmul.f32 %v441_v51, %v374_v11  ;;  %v492_v47 = vmul.f32 %v471_v46, %v380_v42 }
 0x15d   :  { %v501_v33 = vadd.f32 %v500_v14, %v486_v12 }
 0x15e   :  { %v345_v21 = vpop.f32.mrf.mxu2  ;;  %v363_v16 = vpop.f32.mrf.mxu3 }
 0x15f   :  { %v346_v25 = vadd.f32 %v345_v21, %v872_v15  ;;  %v364_v40 = vadd.f32 %v363_v16, %v250_v35 }
 0x161   :  { %v375_v29 = vmax.f32 %v346_v25, 0.0  ;;  %v381_v44 = vmax.f32 %v364_v40, 0.0 }
 0x163   :  { %v487_v34 = vmul.f32 %v446_v56, %v375_v29  ;;  %v493_v50 = vmul.f32 %v476_v49, %v381_v44 }
 0x165   :  { %v502_v28 = vadd.f32 %v501_v33, %v487_v34 }
 0x167   :  { %v503_v15 = vadd.f32 %v502_v28, %v488_v22 }
 0x169   :  { %v504_v19 = vadd.f32 %v503_v15, %v489_v37 }
 0x16b   :  { %v505_v45 = vadd.f32 %v504_v19, %v490_v41 }
 0x16d   :  { %v506_v48 = vadd.f32 %v505_v45, %v491_v43 }
 0x16f   :  { %v507_v51 = vadd.f32 %v506_v48, %v492_v47 }
 0x171   :  { %v508_v52 = vadd.f32 %v507_v51, %v493_v50 }
 0x173   :  { %v509_v53 = vrot.slane %v508_v52, 4 }
 0x175   :  { %v510_v54 = vadd.f32 %v509_v53, %v508_v52 }
 0x177   :  { %v511_v55 = vrot.slane %v510_v54, 2 }
 0x179   :  { %v512_v56 = vadd.f32 %v511_v55, %v510_v54 }
 0x17b   :  { %v513_v57 = vrot.slane %v512_v56, 1 }
 0x17d   :  { %v514_v59 = vadd.f32 %v513_v57, %v512_v56 }
 0x17f   :  { %v517_v60 = vadd.f32 %v516_v58, %v514_v59 }
 0x181   :  { %v602_v61 = vmul.f32 -1.442695, %v517_v60 }
 0x183   :  { %618 = vpow2.f32 %v602_v61 }
 0x189   :  { %v619_v62 = vpop.eup %618 }
 0x18a   :  { %v521_v63 = vadd.f32 1.0, %v619_v62 }
 0x18c   :  { %620 = vrcp.f32 %v521_v63  ;;  %v533_v3 = vand.u32 2147483648, %v521_v63  ;;  %v531_v5 = vand.u32 2147483647, %v521_v63  ;;  %vm527_vm2 = vweird.f32 %v521_v63 }
 0x18e   :  { %v534_v7 = vor.u32 1.1754944e-38, %v533_v3  ;;  %vm532_vm4 = vcmp.eq.f32.partialorder %v531_v5, 8.507059e+37 }
 0x192   :  { %v621_v0 = vpop.eup %620 }
 0x193   :  { %v523_v1 = vmul.f32 %v621_v0, %v521_v63  ;;  %vm528_vm1 = vweird.f32 %v621_v0 }
 0x194   :  { %vm529_vm3 = vmor %vm527_vm2, %vm528_vm1 }
 0x195   :  { %v524_v2 = vsub.f32 1.0, %v523_v1 }
 0x197   :  { %v525_v4 = vmul.f32 %v621_v0, %v524_v2 }
 0x199   :  { %v526_v6 = vadd.f32 %v621_v0, %v525_v4 }
 0x19b   :  { %v530_v8 = vsel %vm529_vm3, %v621_v0, %v526_v6 }
 0x19c   :  { %v535_v9 = vsel %vm532_vm4, %v534_v7, %v530_v8 }
 0x19d   :  { %537 = vst [vmem:[#allocation3] sm:$0x1] %v535_v9 }
 0x19e   :  { %548 = dma.vmem_to_hbm [thread:$0]  %s544_s1, 16, %s546_s5, [#allocation4]  }
 0x19f   :  { %646 = dma.done.wait [#allocation4], 16  }
 0x1a0   :  { %647 = vsyncadd [#allocation4], 4294967280 }
 0x1a1   :  { %553 = vsyncpa [#allocation4], 1 }

</bundles_post_ra>
